<compile_context>
chip_gen: v5e
topology: v5e:2x2
jax: 0.10.0
libtpu: 0.0.40
codegen_flags: <defaults>
</compile_context>

<pallas_src>
import functools

import jax
import jax.numpy as jnp
import numpy as np
from jax.experimental import pallas as pl
from jax.experimental.pallas import tpu as pltpu


def _round_up(x, m):
    return (x + m - 1) // m * m


# ---------------------------------------------------------------------------
# Kernel 1: K-tap temporal conv (stride 1, dilation d) + fused per-tile
# BatchNorm partial statistics.  One grid step = (batch n, lane tile p).
#   w_ref : (K, Cout, Cin)            resident, tiny
#   x_ref : (1, 1, Cin, tm + halo)    per-tile input window (halo = (K-1)*d*V)
#   y_ref : (1, Cout, tm)             lane-dense conv output block
#   s_ref / ss_ref : (1, 1, Cout, 1)  per-tile per-channel sum / sum-of-squares
# ---------------------------------------------------------------------------
def _conv_stats_kernel(w_ref, x_ref, y_ref, s_ref, ss_ref, *,
                       ktaps, dil, v, tm, p_valid):
    acc = jnp.dot(w_ref[0], x_ref[0, 0, :, 0:tm],
                  preferred_element_type=jnp.float32)
    for k in range(1, ktaps):                      # static unroll over taps
        off = k * dil * v                          # static lane offset
        acc += jnp.dot(w_ref[k], x_ref[0, 0, :, off:off + tm],
                       preferred_element_type=jnp.float32)
    y_ref[0] = acc.astype(y_ref.dtype)

    # Masked partial sums for training-mode BN (mask lane-padding columns of
    # the last tile; p_valid is the true number of output positions).
    p0 = pl.program_id(1) * tm
    col = jax.lax.broadcasted_iota(jnp.int32, acc.shape, 1) + p0
    ym = jnp.where(col < p_valid, acc, 0.0)
    s_ref[0, 0] = jnp.sum(ym, axis=1, keepdims=True)
    ss_ref[0, 0] = jnp.sum(ym * ym, axis=1, keepdims=True)


# ---------------------------------------------------------------------------
# Kernel 2: tiled BatchNorm apply: out = y * scale + shift  (per channel).
# ---------------------------------------------------------------------------
def _bn_apply_kernel(y_ref, scale_ref, shift_ref, o_ref):
    o_ref[0] = y_ref[0] * scale_ref[...] + shift_ref[...]


# ---------------------------------------------------------------------------
# Wrapper: full TemporalConv.forward (conv -> BN, training-mode statistics).
# ---------------------------------------------------------------------------
@functools.partial(jax.jit, static_argnames=("stride", "dilation"))
def temporal_conv_forward(x, w, b, gamma, beta, *, stride=1, dilation=1):
    """x: (N, Cin, T, V) f32.  w: (Cout, Cin, K, 1).  Returns (N, Cout, T_out, V)."""
    del b  # conv bias cancels exactly under training-mode BatchNorm

    N, Cin, T, V = x.shape
    Cout, _, K, _ = w.shape
    pad = (K + (K - 1) * (dilation - 1) - 1) // 2
    T_s1 = T + 2 * pad - dilation * (K - 1)                 # stride-1 out length
    T_out = (T + 2 * pad - dilation * (K - 1) - 1) // stride + 1
    P1 = T_s1 * V                                           # stride-1 flat positions
    halo = (K - 1) * dilation * V

    tm = min(512, _round_up(P1, 128))
    n_p = int(pl.cdiv(P1, tm))
    P_pad = n_p * tm
    wlen = tm + halo

    # Channels-first flat layout: just pad + reshape (no transpose, no K-way im2col).
    x_flat = jnp.pad(x, ((0, 0), (0, 0), (pad, pad), (0, 0)))
    x_flat = x_flat.reshape(N, Cin, (T + 2 * pad) * V)
    extra = P_pad + halo - x_flat.shape[2]
    if extra > 0:
        x_flat = jnp.pad(x_flat, ((0, 0), (0, 0), (0, extra)))

    # Overlapping per-tile windows: only the halo columns are duplicated.
    idx = jnp.arange(n_p, dtype=jnp.int32)[:, None] * tm + \
        jnp.arange(wlen, dtype=jnp.int32)[None, :]
    x_win = jnp.moveaxis(jnp.take(x_flat, idx, axis=2), 2, 1)   # (N, n_p, Cin, wlen)

    w_taps = jnp.transpose(w[..., 0], (2, 0, 1)).astype(jnp.float32)  # (K, Cout, Cin)

    conv_kernel = functools.partial(
        _conv_stats_kernel, ktaps=K, dil=dilation, v=V, tm=tm, p_valid=P1)

    y, psum, pssq = pl.pallas_call(
        conv_kernel,
        out_shape=(
            jax.ShapeDtypeStruct((N, Cout, P_pad), jnp.float32),
            jax.ShapeDtypeStruct((N, n_p, Cout, 1), jnp.float32),
            jax.ShapeDtypeStruct((N, n_p, Cout, 1), jnp.float32),
        ),
        grid_spec=pltpu.PrefetchScalarGridSpec(
            num_scalar_prefetch=0,
            grid=(N, n_p),
            in_specs=[
                pl.BlockSpec((K, Cout, Cin), lambda n, p: (0, 0, 0)),
                pl.BlockSpec((1, 1, Cin, wlen), lambda n, p: (n, p, 0, 0)),
            ],
            out_specs=(
                pl.BlockSpec((1, Cout, tm), lambda n, p: (n, 0, p)),
                pl.BlockSpec((1, 1, Cout, 1), lambda n, p: (n, p, 0, 0)),
                pl.BlockSpec((1, 1, Cout, 1), lambda n, p: (n, p, 0, 0)),
            ),
        ),
        compiler_params=pltpu.CompilerParams(
            dimension_semantics=("parallel", "parallel")),
    )(w_taps, x_win)

    # ---- batch statistics (tiny reduction in plain JAX) ----
    if stride == 1:
        y_bn, P_use, tm_a, n_pa, P_pad_a = y, P1, tm, n_p, P_pad
        tot_s = jnp.sum(psum, axis=(0, 1, 3))                # (Cout,)
        tot_ss = jnp.sum(pssq, axis=(0, 1, 3))
    else:
        # TODO(synk): stride > 1 computes the stride-1 conv and subsamples
        # (correct but overcomputes); a strided window gather would avoid it.
        yv = y[:, :, :P1].reshape(N, Cout, T_s1, V)[:, :, ::stride, :]
        P_use = T_out * V
        y_flat2 = yv.reshape(N, Cout, P_use)
        tot_s = jnp.sum(y_flat2, axis=(0, 2))
        tot_ss = jnp.sum(y_flat2 * y_flat2, axis=(0, 2))
        tm_a = min(512, _round_up(P_use, 128))
        n_pa = int(pl.cdiv(P_use, tm_a))
        P_pad_a = n_pa * tm_a
        y_bn = jnp.pad(y_flat2, ((0, 0), (0, 0), (0, P_pad_a - P_use)))

    cnt = N * P_use
    mean = tot_s / cnt
    var = jnp.maximum(tot_ss / cnt - mean * mean, 0.0)        # biased batch var
    inv = jax.lax.rsqrt(var + 1e-5)
    scale = (gamma * inv).reshape(Cout, 1).astype(jnp.float32)
    shift = (beta - mean * gamma * inv).reshape(Cout, 1).astype(jnp.float32)

    out = pl.pallas_call(
        _bn_apply_kernel,
        out_shape=jax.ShapeDtypeStruct((N, Cout, P_pad_a), jnp.float32),
        grid_spec=pltpu.PrefetchScalarGridSpec(
            num_scalar_prefetch=0,
            grid=(N, n_pa),
            in_specs=[
                pl.BlockSpec((1, Cout, tm_a), lambda n, p: (n, 0, p)),
                pl.BlockSpec((Cout, 1), lambda n, p: (0, 0)),
                pl.BlockSpec((Cout, 1), lambda n, p: (0, 0)),
            ],
            out_specs=pl.BlockSpec((1, Cout, tm_a), lambda n, p: (n, 0, p)),
        ),
        compiler_params=pltpu.CompilerParams(
            dimension_semantics=("parallel", "parallel")),
    )(y_bn, scale, shift)

    return out[:, :, :P_use].reshape(N, Cout, T_out, V)


# ---------------------------------------------------------------------------
# Pure-JAX reference (conv + bias + training-mode BN) for correctness check.
# ---------------------------------------------------------------------------
def _reference(x, w, b, gamma, beta, *, stride, dilation):
    K = w.shape[2]
    pad = (K + (K - 1) * (dilation - 1) - 1) // 2
    y = jax.lax.conv_general_dilated(
        x, w,
        window_strides=(stride, 1),
        padding=((pad, pad), (0, 0)),
        rhs_dilation=(dilation, 1),
        dimension_numbers=("NCHW", "OIHW", "NCHW"),
    ) + b.reshape(1, -1, 1, 1)
    mean = jnp.mean(y, axis=(0, 2, 3), keepdims=True)
    var = jnp.mean((y - mean) ** 2, axis=(0, 2, 3), keepdims=True)
    return (y - mean) * jax.lax.rsqrt(var + 1e-5) * gamma.reshape(
        1, -1, 1, 1) + beta.reshape(1, -1, 1, 1)


if __name__ == "__main__":
    # Small shapes consistent with the module: N=2, C_in=4, C_out=8, T=16, V=16, K=5
    N, Cin, Cout, T, V, K = 2, 4, 8, 16, 16, 5

    key = jax.random.PRNGKey(0)
    kx, kw, kb, kg, kbe = jax.random.split(key, 5)
    x = jax.random.normal(kx, (N, Cin, T, V), dtype=jnp.float32)
    w = 0.1 * jax.random.normal(kw, (Cout, Cin, K, 1), dtype=jnp.float32)
    b = 0.1 * jax.random.normal(kb, (Cout,), dtype=jnp.float32)
    gamma = 1.0 + 0.1 * jax.random.normal(kg, (Cout,), dtype=jnp.float32)
    beta = 0.05 * jax.random.normal(kbe, (Cout,), dtype=jnp.float32)

    # dilations [1, 2] as used by MultiScale_TemporalConv, plus a strided case.
    for (stride, dilation) in [(1, 1), (1, 2), (2, 1)]:
        out = temporal_conv_forward(
            x, w, b, gamma, beta, stride=stride, dilation=dilation)
        out = jax.block_until_ready(out)
        ref = _reference(x, w, b, gamma, beta, stride=stride, dilation=dilation)
        np.testing.assert_allclose(
            np.asarray(out), np.asarray(ref), rtol=2e-3, atol=2e-3)

    print("KERNEL_OK")
</pallas_src>

<mosaic_0001>
module attributes {stable_mosaic.version = 11 : i64} {
  func.func @_conv_stats_kernel(%arg0: i32, %arg1: i32, %arg2: memref<5x8x4xf32, #tpu.memory_space<vmem>>, %arg3: memref<1x1x4x320xf32, #tpu.memory_space<vmem>>, %arg4: memref<1x8x256xf32, #tpu.memory_space<vmem>>, %arg5: memref<1x1x8x1xf32, #tpu.memory_space<vmem>>, %arg6: memref<1x1x8x1xf32, #tpu.memory_space<vmem>>) attributes {dimension_semantics = [#tpu.dimension_semantics<parallel>, #tpu.dimension_semantics<parallel>], iteration_bounds = array<i64: 2, 1>, scalar_prefetch = 0 : i64, scratch_operands = 0 : i64, tpu.core_type = #tpu.core_type<tc>, window_params = [{pipeline_mode = #tpu.pipeline_mode<synchronous>, transform_indices = @transform_0, window_bounds = array<i64: 5, 8, 4>}, {transform_indices = @transform_1, window_bounds = array<i64: 1, 1, 4, 320>}, {transform_indices = @transform_2, window_bounds = array<i64: 1, 8, 256>}, {transform_indices = @transform_3, window_bounds = array<i64: 1, 1, 8, 1>}, {transform_indices = @transform_4, window_bounds = array<i64: 1, 1, 8, 1>}]} {
    %c0 = arith.constant 0 : index
    %c0_0 = arith.constant 0 : index
    %c0_1 = arith.constant 0 : index
    %0 = vector.load %arg2[%c0, %c0_0, %c0_1] : memref<5x8x4xf32, #tpu.memory_space<vmem>>, vector<1x8x4xf32>
    %1 = vector.shape_cast %0 : vector<1x8x4xf32> to vector<8x4xf32>
    %c0_2 = arith.constant 0 : index
    %c0_3 = arith.constant 0 : index
    %c0_4 = arith.constant 0 : index
    %c0_5 = arith.constant 0 : index
    %2 = vector.load %arg3[%c0_2, %c0_3, %c0_4, %c0_5] : memref<1x1x4x320xf32, #tpu.memory_space<vmem>>, vector<1x1x4x256xf32>
    %3 = vector.shape_cast %2 : vector<1x1x4x256xf32> to vector<4x256xf32>
    %cst = arith.constant dense<0.000000e+00> : vector<8x256xf32>
    %4 = tpu.matmul %1, %3, %cst {dimension_numbers = #tpu.dot_dimension_numbers<[1], [0], [0], [1], [0, 0, 1, 1], [], []>} : vector<8x4xf32>, vector<4x256xf32>, vector<8x256xf32> -> vector<8x256xf32>
    %c1 = arith.constant 1 : index
    %c0_6 = arith.constant 0 : index
    %c0_7 = arith.constant 0 : index
    %5 = vector.load %arg2[%c1, %c0_6, %c0_7] : memref<5x8x4xf32, #tpu.memory_space<vmem>>, vector<1x8x4xf32>
    %6 = vector.shape_cast %5 : vector<1x8x4xf32> to vector<8x4xf32>
    %c0_8 = arith.constant 0 : index
    %c0_9 = arith.constant 0 : index
    %c0_10 = arith.constant 0 : index
    %c16 = arith.constant 16 : index
    %7 = vector.load %arg3[%c0_8, %c0_9, %c0_10, %c16] : memref<1x1x4x320xf32, #tpu.memory_space<vmem>>, vector<1x1x4x256xf32>
    %8 = vector.shape_cast %7 : vector<1x1x4x256xf32> to vector<4x256xf32>
    %cst_11 = arith.constant dense<0.000000e+00> : vector<8x256xf32>
    %9 = tpu.matmul %6, %8, %cst_11 {dimension_numbers = #tpu.dot_dimension_numbers<[1], [0], [0], [1], [0, 0, 1, 1], [], []>} : vector<8x4xf32>, vector<4x256xf32>, vector<8x256xf32> -> vector<8x256xf32>
    %10 = arith.addf %4, %9 : vector<8x256xf32>
    %c2 = arith.constant 2 : index
    %c0_12 = arith.constant 0 : index
    %c0_13 = arith.constant 0 : index
    %11 = vector.load %arg2[%c2, %c0_12, %c0_13] : memref<5x8x4xf32, #tpu.memory_space<vmem>>, vector<1x8x4xf32>
    %12 = vector.shape_cast %11 : vector<1x8x4xf32> to vector<8x4xf32>
    %c0_14 = arith.constant 0 : index
    %c0_15 = arith.constant 0 : index
    %c0_16 = arith.constant 0 : index
    %c32 = arith.constant 32 : index
    %13 = vector.load %arg3[%c0_14, %c0_15, %c0_16, %c32] : memref<1x1x4x320xf32, #tpu.memory_space<vmem>>, vector<1x1x4x256xf32>
    %14 = vector.shape_cast %13 : vector<1x1x4x256xf32> to vector<4x256xf32>
    %cst_17 = arith.constant dense<0.000000e+00> : vector<8x256xf32>
    %15 = tpu.matmul %12, %14, %cst_17 {dimension_numbers = #tpu.dot_dimension_numbers<[1], [0], [0], [1], [0, 0, 1, 1], [], []>} : vector<8x4xf32>, vector<4x256xf32>, vector<8x256xf32> -> vector<8x256xf32>
    %16 = arith.addf %10, %15 : vector<8x256xf32>
    %c3 = arith.constant 3 : index
    %c0_18 = arith.constant 0 : index
    %c0_19 = arith.constant 0 : index
    %17 = vector.load %arg2[%c3, %c0_18, %c0_19] : memref<5x8x4xf32, #tpu.memory_space<vmem>>, vector<1x8x4xf32>
    %18 = vector.shape_cast %17 : vector<1x8x4xf32> to vector<8x4xf32>
    %c0_20 = arith.constant 0 : index
    %c0_21 = arith.constant 0 : index
    %c0_22 = arith.constant 0 : index
    %c48 = arith.constant 48 : index
    %19 = vector.load %arg3[%c0_20, %c0_21, %c0_22, %c48] : memref<1x1x4x320xf32, #tpu.memory_space<vmem>>, vector<1x1x4x256xf32>
    %20 = vector.shape_cast %19 : vector<1x1x4x256xf32> to vector<4x256xf32>
    %cst_23 = arith.constant dense<0.000000e+00> : vector<8x256xf32>
    %21 = tpu.matmul %18, %20, %cst_23 {dimension_numbers = #tpu.dot_dimension_numbers<[1], [0], [0], [1], [0, 0, 1, 1], [], []>} : vector<8x4xf32>, vector<4x256xf32>, vector<8x256xf32> -> vector<8x256xf32>
    %22 = arith.addf %16, %21 : vector<8x256xf32>
    %c4 = arith.constant 4 : index
    %c0_24 = arith.constant 0 : index
    %c0_25 = arith.constant 0 : index
    %23 = vector.load %arg2[%c4, %c0_24, %c0_25] : memref<5x8x4xf32, #tpu.memory_space<vmem>>, vector<1x8x4xf32>
    %24 = vector.shape_cast %23 : vector<1x8x4xf32> to vector<8x4xf32>
    %c0_26 = arith.constant 0 : index
    %c0_27 = arith.constant 0 : index
    %c0_28 = arith.constant 0 : index
    %c64 = arith.constant 64 : index
    %25 = vector.load %arg3[%c0_26, %c0_27, %c0_28, %c64] : memref<1x1x4x320xf32, #tpu.memory_space<vmem>>, vector<1x1x4x256xf32>
    %26 = vector.shape_cast %25 : vector<1x1x4x256xf32> to vector<4x256xf32>
    %cst_29 = arith.constant dense<0.000000e+00> : vector<8x256xf32>
    %27 = tpu.matmul %24, %26, %cst_29 {dimension_numbers = #tpu.dot_dimension_numbers<[1], [0], [0], [1], [0, 0, 1, 1], [], []>} : vector<8x4xf32>, vector<4x256xf32>, vector<8x256xf32> -> vector<8x256xf32>
    %28 = arith.addf %22, %27 : vector<8x256xf32>
    %c0_30 = arith.constant 0 : index
    %c0_31 = arith.constant 0 : index
    %c0_32 = arith.constant 0 : index
    %29 = vector.load %arg4[%c0_30, %c0_31, %c0_32] : memref<1x8x256xf32, #tpu.memory_space<vmem>>, vector<1x8x256xf32>
    %30 = vector.shape_cast %29 : vector<1x8x256xf32> to vector<8x256xf32>
    %31 = vector.shape_cast %28 : vector<8x256xf32> to vector<1x8x256xf32>
    tpu.vector_store %arg4[%c0_30, %c0_31, %c0_32], %31 {strides = array<i32>} : memref<1x8x256xf32, #tpu.memory_space<vmem>>, vector<1x8x256xf32>,
    %c256_i32 = arith.constant 256 : i32
    %32 = arith.muli %arg1, %c256_i32 : i32
    %33 = tpu.iota {dimensions = array<i32: 1>} : vector<8x256xi32>
    %34 = vector.broadcast %32 : i32 to vector<8x256xi32>
    %35 = arith.addi %33, %34 : vector<8x256xi32>
    %c256_i32_33 = arith.constant 256 : i32
    %36 = vector.broadcast %c256_i32_33 : i32 to vector<8x256xi32>
    %37 = arith.cmpi slt, %35, %36 : vector<8x256xi32>
    %cst_34 = arith.constant 0.000000e+00 : f32
    %38 = vector.broadcast %cst_34 : f32 to vector<8x256xf32>
    %39 = arith.select %37, %28, %38 : vector<8x256xi1>, vector<8x256xf32>
    %cst_35 = arith.constant dense<0.000000e+00> : vector<8xf32>
    %40 = vector.multi_reduction <add>, %39, %cst_35 [1] : vector<8x256xf32> to vector<8xf32>
    %41 = vector.shape_cast %40 : vector<8xf32> to vector<8x1xf32>
    %c0_36 = arith.constant 0 : index
    %c0_37 = arith.constant 0 : index
    %c0_38 = arith.constant 0 : index
    %c0_39 = arith.constant 0 : index
    %42 = vector.load %arg5[%c0_36, %c0_37, %c0_38, %c0_39] : memref<1x1x8x1xf32, #tpu.memory_space<vmem>>, vector<1x1x8x1xf32>
    %43 = vector.shape_cast %42 : vector<1x1x8x1xf32> to vector<8x1xf32>
    %44 = vector.shape_cast %41 : vector<8x1xf32> to vector<1x1x8x1xf32>
    tpu.vector_store %arg5[%c0_36, %c0_37, %c0_38, %c0_39], %44 {strides = array<i32>} : memref<1x1x8x1xf32, #tpu.memory_space<vmem>>, vector<1x1x8x1xf32>,
    %45 = arith.mulf %39, %39 : vector<8x256xf32>
    %cst_40 = arith.constant dense<0.000000e+00> : vector<8xf32>
    %46 = vector.multi_reduction <add>, %45, %cst_40 [1] : vector<8x256xf32> to vector<8xf32>
    %47 = vector.shape_cast %46 : vector<8xf32> to vector<8x1xf32>
    %c0_41 = arith.constant 0 : index
    %c0_42 = arith.constant 0 : index
    %c0_43 = arith.constant 0 : index
    %c0_44 = arith.constant 0 : index
    %48 = vector.load %arg6[%c0_41, %c0_42, %c0_43, %c0_44] : memref<1x1x8x1xf32, #tpu.memory_space<vmem>>, vector<1x1x8x1xf32>
    %49 = vector.shape_cast %48 : vector<1x1x8x1xf32> to vector<8x1xf32>
    %50 = vector.shape_cast %47 : vector<8x1xf32> to vector<1x1x8x1xf32>
    tpu.vector_store %arg6[%c0_41, %c0_42, %c0_43, %c0_44], %50 {strides = array<i32>} : memref<1x1x8x1xf32, #tpu.memory_space<vmem>>, vector<1x1x8x1xf32>,
    return
  }
  func.func @transform_0(%arg0: i32, %arg1: i32) -> (i32, i32, i32) {
    %c0_i32 = arith.constant 0 : i32
    %c0_i32_0 = arith.constant 0 : i32
    %c0_i32_1 = arith.constant 0 : i32
    %c0_i32_2 = arith.constant 0 : i32
    return %c0_i32, %c0_i32_0, %c0_i32_1 : i32, i32, i32
  }
  func.func @transform_1(%arg0: i32, %arg1: i32) -> (i32, i32, i32, i32) {
    %c0_i32 = arith.constant 0 : i32
    %c0_i32_0 = arith.constant 0 : i32
    %c0_i32_1 = arith.constant 0 : i32
    return %arg0, %arg1, %c0_i32, %c0_i32_0 : i32, i32, i32, i32
  }
  func.func @transform_2(%arg0: i32, %arg1: i32) -> (i32, i32, i32) {
    %c0_i32 = arith.constant 0 : i32
    %c0_i32_0 = arith.constant 0 : i32
    return %arg0, %c0_i32, %arg1 : i32, i32, i32
  }
  func.func @transform_3(%arg0: i32, %arg1: i32) -> (i32, i32, i32, i32) {
    %c0_i32 = arith.constant 0 : i32
    %c0_i32_0 = arith.constant 0 : i32
    %c0_i32_1 = arith.constant 0 : i32
    return %arg0, %arg1, %c0_i32, %c0_i32_0 : i32, i32, i32, i32
  }
  func.func @transform_4(%arg0: i32, %arg1: i32) -> (i32, i32, i32, i32) {
    %c0_i32 = arith.constant 0 : i32
    %c0_i32_0 = arith.constant 0 : i32
    %c0_i32_1 = arith.constant 0 : i32
    return %arg0, %arg1, %c0_i32, %c0_i32_0 : i32, i32, i32, i32
  }
}

module attributes {stable_mosaic.version = 11 : i64} {
  func.func @_bn_apply_kernel(%arg0: i32, %arg1: i32, %arg2: memref<1x8x256xf32, #tpu.memory_space<vmem>>, %arg3: memref<8x1xf32, #tpu.memory_space<vmem>>, %arg4: memref<8x1xf32, #tpu.memory_space<vmem>>, %arg5: memref<1x8x256xf32, #tpu.memory_space<vmem>>) attributes {dimension_semantics = [#tpu.dimension_semantics<parallel>, #tpu.dimension_semantics<parallel>], iteration_bounds = array<i64: 2, 1>, scalar_prefetch = 0 : i64, scratch_operands = 0 : i64, tpu.core_type = #tpu.core_type<tc>, window_params = [{transform_indices = @transform_0, window_bounds = array<i64: 1, 8, 256>}, {pipeline_mode = #tpu.pipeline_mode<synchronous>, transform_indices = @transform_1, window_bounds = array<i64: 8, 1>}, {pipeline_mode = #tpu.pipeline_mode<synchronous>, transform_indices = @transform_2, window_bounds = array<i64: 8, 1>}, {transform_indices = @transform_3, window_bounds = array<i64: 1, 8, 256>}]} {
    %c0 = arith.constant 0 : index
    %c0_0 = arith.constant 0 : index
    %c0_1 = arith.constant 0 : index
    %0 = vector.load %arg2[%c0, %c0_0, %c0_1] : memref<1x8x256xf32, #tpu.memory_space<vmem>>, vector<1x8x256xf32>
    %1 = vector.shape_cast %0 : vector<1x8x256xf32> to vector<8x256xf32>
    %c0_2 = arith.constant 0 : index
    %c0_3 = arith.constant 0 : index
    %2 = vector.load %arg3[%c0_2, %c0_3] : memref<8x1xf32, #tpu.memory_space<vmem>>, vector<8x1xf32>
    %3 = vector.broadcast %2 : vector<8x1xf32> to vector<8x256xf32>
    %4 = arith.mulf %1, %3 : vector<8x256xf32>
    %c0_4 = arith.constant 0 : index
    %c0_5 = arith.constant 0 : index
    %5 = vector.load %arg4[%c0_4, %c0_5] : memref<8x1xf32, #tpu.memory_space<vmem>>, vector<8x1xf32>
    %6 = vector.broadcast %5 : vector<8x1xf32> to vector<8x256xf32>
    %7 = arith.addf %4, %6 : vector<8x256xf32>
    %c0_6 = arith.constant 0 : index
    %c0_7 = arith.constant 0 : index
    %c0_8 = arith.constant 0 : index
    %8 = vector.load %arg5[%c0_6, %c0_7, %c0_8] : memref<1x8x256xf32, #tpu.memory_space<vmem>>, vector<1x8x256xf32>
    %9 = vector.shape_cast %8 : vector<1x8x256xf32> to vector<8x256xf32>
    %10 = vector.shape_cast %7 : vector<8x256xf32> to vector<1x8x256xf32>
    tpu.vector_store %arg5[%c0_6, %c0_7, %c0_8], %10 {strides = array<i32>} : memref<1x8x256xf32, #tpu.memory_space<vmem>>, vector<1x8x256xf32>,
    return
  }
  func.func @transform_0(%arg0: i32, %arg1: i32) -> (i32, i32, i32) {
    %c0_i32 = arith.constant 0 : i32
    %c0_i32_0 = arith.constant 0 : i32
    return %arg0, %c0_i32, %arg1 : i32, i32, i32
  }
  func.func @transform_1(%arg0: i32, %arg1: i32) -> (i32, i32) {
    %c0_i32 = arith.constant 0 : i32
    %c0_i32_0 = arith.constant 0 : i32
    %c0_i32_1 = arith.constant 0 : i32
    return %c0_i32, %c0_i32_0 : i32, i32
  }
  func.func @transform_2(%arg0: i32, %arg1: i32) -> (i32, i32) {
    %c0_i32 = arith.constant 0 : i32
    %c0_i32_0 = arith.constant 0 : i32
    %c0_i32_1 = arith.constant 0 : i32
    return %c0_i32, %c0_i32_0 : i32, i32
  }
  func.func @transform_3(%arg0: i32, %arg1: i32) -> (i32, i32, i32) {
    %c0_i32 = arith.constant 0 : i32
    %c0_i32_0 = arith.constant 0 : i32
    return %arg0, %c0_i32, %arg1 : i32, i32, i32
  }
}

</mosaic_0001>

<bundles_post_ra>
// kernel: temporal_conv_forward.3
= control target key start
LH: loop header
LB: loop body
LE: loop exit
PB: predicated region body
PF: predicated region fallthrough
CT: control target
= control target key end

     0   :  { %s401_s12 = smov 0   ;;  %s403_s13 = smov 0   ;;  %s437_s0 = inlined_call_operand.vmem [shape: f32[2,8,256], index: 0, kind: input, shape index: {}]   ;;  %s438_s1 = inlined_call_operand.vmem [shape: f32[8,1], index: 1, kind: input, shape index: {}]   ;;  %s439_s2 = inlined_call_operand.vmem [shape: f32[8,1], index: 2, kind: input, shape index: {}]   ;;  %s440_s3 = inlined_call_operand.vmem [shape: f32[2,8,256], index: 3, kind: output, shape index: {}]  }
   0x1   :  { %s405_s14 = smov 0  }
   0x2 LB: > { %s25_s15 = sadd.s32 1, %s374_s13  ;;  %p321_p0 = scmp.ge.s32.totalorder %s378_s14, 1  ;;  %s378_s14 = sphi %s405_s14, %s13_s14   ;;  %s374_s13 = sphi %s403_s13, %s442_s13   ;;  %s370_s12 = sphi %s401_s12, %s441_s12  }
   0x3   : > { %p27_p1 = scmp.ge.s32.totalorder %s25_s15, 2  ;;  %p158_p2 = scmp.lt.s32.totalorder %s378_s14, 3 }
   0x5   : > { %s444_s15 = smov (%p27_p1, %s25_s15), 0  ;;  %p159_p3 = pnand %p321_p0, %p158_p2 }
   0x6   : > { %p191_p4 = scmp.lt.s32.totalorder (!%p159_p3), %s370_s12, 1 }
   0x7   : > { %162 = sbr.rel (%p159_p3) target bundleno = 141 (0x8d), region = 32 }
   0xc   : > { %v212_v0 = vld [vmem:[%s438_s1] sm:$0xff]  ;;  %v380_v1 = vmov 0   ;;  %s446_s12 = smov (!%p191_p4, %s370_s12), 1 }
   0xd   : > { %355 = vset.pattern.permute.xlu0 %v380_v1  ;;  %v220_v2 = vld [vmem:[%s439_s2] sm:$0xff]  ;;  %s328_s20 = sshll.u32 %s446_s12, 4 }
   0xe   : > { %215 = vperm.xlu0 %355, %v212_v0   ;;  %s198_s23 = scalar_lea.vmem %s437_s0, %s328_s20  ;;  %s208_s26 = scalar_lea.vmem %s440_s3, %s328_s20 }
   0xf   : > { %v210_v4 = vld [vmem:[%s198_s23] sm:$0xff]  ;;  %v211_v5 = vld [vmem:[%s198_s23 + $0x8] sm:$0xff] }
  0x16   : > { %223 = vperm.xlu0 %355, %v220_v2  }
  0x80   : > { %v216_v3 = vpop.permute.xlu0 %215 }
  0x81   : > { %v218_v6 = vmul.f32 %v216_v3, %v210_v4  ;;  %v219_v7 = vmul.f32 %v216_v3, %v211_v5 }
  0x88   : > { %v224_v8 = vpop.permute.xlu0 %223 }
  0x89   : > { %v226_v9 = vadd.f32 %v224_v8, %v218_v6  ;;  %v227_v10 = vadd.f32 %v224_v8, %v219_v7 }
  0x8b   : > { %228 = vst [vmem:[%s208_s26] sm:$0xff] %v226_v9 }
  0x8c   : > { %229 = vst [vmem:[%s208_s26 + $0x8] sm:$0xff] %v227_v10 }
  0x8d PF: > { %s13_s14 = sadd.s32 1, %s378_s14   ;;  %s441_s12 = smov %s374_s13 }
  0x8e   : > { %p10_p5 = scmp.ge.s32.totalorder %s13_s14, 4   ;;  %s442_s13 = smov %s444_s15 }
  0x90   :  { %12 = sbr.rel (!%p10_p5) target bundleno = 2 (0x2), region = 62 }

// kernel: temporal_conv_forward.2
= control target key start
LH: loop header
LB: loop body
LE: loop exit
PB: predicated region body
PF: predicated region fallthrough
CT: control target
= control target key end

     0   :  { %s918_s15 = smov 0   ;;  %s920_s16 = smov 0   ;;  %s997_s0 = inlined_call_operand.vmem [shape: f32[5,8,4], index: 0, kind: input, shape index: {}]   ;;  %s998_s1 = inlined_call_operand.vmem [shape: f32[2,1,4,320], index: 1, kind: input, shape index: {}]   ;;  %s999_s2 = inlined_call_operand.vmem [shape: f32[2,8,256], index: 2, kind: output, shape index: {0}]   ;;  %s1000_s3 = inlined_call_operand.vmem [shape: f32[2,1,8,1], index: 3, kind: output, shape index: {1}]   ;;  %s1001_s4 = inlined_call_operand.vmem [shape: f32[2,1,8,1], index: 4, kind: output, shape index: {2}]  }
   0x1   :  { %s922_s17 = smov 0  }
   0x2 LB: > { %s27_s18 = sadd.s32 1, %s883_s16  ;;  %p803_p0 = scmp.ge.s32.totalorder %s887_s17, 1  ;;  %s887_s17 = sphi %s922_s17, %s15_s17   ;;  %s883_s16 = sphi %s920_s16, %s1003_s16   ;;  %s879_s15 = sphi %s918_s15, %s1002_s15  }
   0x3   : > { %p29_p1 = scmp.ge.s32.totalorder %s27_s18, 2  ;;  %p191_p2 = scmp.lt.s32.totalorder %s887_s17, 3 }
   0x5   : > { %s1005_s18 = smov (%p29_p1, %s27_s18), 0  ;;  %p192_p3 = pnand %p803_p0, %p191_p2 }
   0x6   : > { %p239_p4 = scmp.lt.s32.totalorder (!%p192_p3), %s879_s15, 1  ;;  %s889_s23 = smov (!%p192_p3), 112  }
   0x7   : > { %195 = sbr.rel (%p192_p3) target bundleno = 423 (0x1a7), region = 28  ;;  %s890_s24 = smov (!%p192_p3), 96  }
   0x8   : > { %s891_s25 = smov (!%p192_p3), 80   ;;  %s892_s26 = smov (!%p192_p3), 64  }
   0xc   : > { %s1007_s15 = smov (!%p239_p4, %s879_s15), 1  ;;  %vm298_vm0 = vcmask 1043456   ;;  %vm294_vm1 = vcmask 31744   ;;  %v272_v19 = vld [vmem:[%s997_s0] sm:$0xff]  ;;  %vm411_vm2 = vcmask 785408   ;;  %vm291_vm3 = vcmask 916480  }
   0xd   : > { %s836_s19 = smul.u32 12, %s1007_s15  ;;  %v809_v26 = vld [vmem:[%s997_s0 + $0x8] sm:$0xff]  ;;  %v818_v30 = vld [vmem:[%s997_s0 + $0x10] sm:$0xff]  ;;  %vm481_vm4 = vcmask 654336   ;;  %v823_v35 = vld [vmem:[%s997_s0 + $0x18] sm:$0xff]  ;;  %vm551_vm5 = vcmask 523264  }
   0xe   : > { %v828_v41 = vld [vmem:[%s997_s0 + $0x20] sm:$0xff]  ;;  %s835_s11 = sshll.u32 %s1007_s15, 4  ;;  %vm619_vm6 = vcmask 7168  }
   0xf   : > { %s247_s22 = scalar_lea.vmem %s998_s1, %s836_s19  ;;  %s256_s14 = scalar_lea.vmem %s999_s2, %s835_s11 }
  0x10   : > { %v273_v0 = vld [vmem:[%s247_s22] sm:$0xff]  ;;  %v276_v1 = vld [vmem:[%s247_s22 + $0x8] sm:$0xf]  ;;  %s807_s19 = sshll.u32 %s1007_s15, 3 }
  0x11   : > { %279 = vst [vmem:[#allocation1] ss:$2 sm:$0xff] %v273_v0  ;;  %v396_v2 = vld [vmem:[%s247_s22 + $0x8] sm:$0xf] }
  0x12   : > { %281 = vst [vmem:[#allocation1 + $0x10] ss:$2 sm:$0xff] %v276_v1  ;;  %v466_v6 = vld [vmem:[%s247_s22 + $0x8] sm:$0xf] }
  0x13   : > { %v536_v10 = vld [vmem:[%s247_s22 + $0x8] sm:$0xf]  ;;  %s264_s22 = scalar_lea.vmem %s1000_s3, %s807_s19 }
  0x18   : > { %v282_v3 = vld.sshfl [vmem:[#allocation1] sm:$0xff pattern:$0x75316420]  ;;  %v283_v4 = vld.sshfl [vmem:[#allocation1 + $0x8] sm:$0xff pattern:$0x75316420] }
  0x19   : > { %285 = vrot.lane.b32.xlu0 %v282_v3, %s889_s23  ;;  %v284_v5 = vld.sshfl [vmem:[#allocation1 + $0x10] sm:$0xff pattern:$0x75316420]  ;;  %343 = vst [vmem:[#allocation1] ss:$2 sm:$0xff] %v273_v0 }
  0x1a   : > { %289 = vrot.lane.b32.xlu1 %v284_v5, %s889_s23  ;;  %401 = vst [vmem:[#allocation1 + $0x10] ss:$2 sm:$0xff] %v396_v2 }
  0x20   : > { %v344_v7 = vld.sshfl [vmem:[#allocation1] sm:$0xff pattern:$0x75316420]  ;;  %v345_v8 = vld.sshfl [vmem:[#allocation1 + $0x8] sm:$0xff pattern:$0x75316420] }
  0x21   : > { %287 = vrot.lane.b32.xlu0 %v283_v4, %s889_s23  ;;  %399 = vst [vmem:[#allocation1] ss:$2 sm:$0xff] %v273_v0  ;;  %v404_v9 = vld.sshfl [vmem:[#allocation1 + $0x10] sm:$0xff pattern:$0x75316420]  ;;  %814 = vmatpush.msk.msra.mxu2 %vm298_vm0, %v344_v7 }
  0x22   : > { %409 = vrot.lane.b32.xlu2 %v404_v9, %s890_s24  ;;  %471 = vst [vmem:[#allocation1 + $0x10] ss:$2 sm:$0xff] %v466_v6  ;;  %816 = vmatpush.msk.msra.mxu3 %vm298_vm0, %v345_v8 }
  0x23   : > { %815 = vmatmul.msk.f32.vlgmr.msra.gmra.mxu2 %vm294_vm1, %v272_v19  ;;  %817 = vmatmul.msk.f32.vlgmr.msra.gmra.mxu3 %vm294_vm1, %v272_v19 }
  0x28   : > { %v402_v11 = vld.sshfl [vmem:[#allocation1] sm:$0xff pattern:$0x75316420]  ;;  %v403_v12 = vld.sshfl [vmem:[#allocation1 + $0x8] sm:$0xff pattern:$0x75316420] }
  0x29   : > { %405 = vrot.lane.b32.xlu1 %v402_v11, %s890_s24  ;;  %469 = vst [vmem:[#allocation1] ss:$2 sm:$0xff] %v273_v0  ;;  %v474_v13 = vld.sshfl [vmem:[#allocation1 + $0x10] sm:$0xff pattern:$0x75316420] }
  0x2a   : > { %407 = vrot.lane.b32.xlu2 %v403_v12, %s890_s24  ;;  %541 = vst [vmem:[#allocation1 + $0x10] ss:$2 sm:$0xff] %v536_v10 }
  0x30   : > { %v473_v14 = vld.sshfl [vmem:[#allocation1 + $0x8] sm:$0xff pattern:$0x75316420]  ;;  %v472_v15 = vld.sshfl [vmem:[#allocation1] sm:$0xff pattern:$0x75316420] }
  0x31   : > { %477 = vrot.lane.b32.xlu1 %v473_v14, %s891_s25  ;;  %475 = vrot.lane.b32.xlu0 %v472_v15, %s891_s25  ;;  %539 = vst [vmem:[#allocation1] ss:$2 sm:$0xff] %v273_v0  ;;  %v544_v16 = vld.sshfl [vmem:[#allocation1 + $0x10] sm:$0xff pattern:$0x75316420] }
  0x32   : > { %479 = vrot.lane.b32.xlu2 %v474_v13, %s891_s25  ;;  %s271_s25 = scalar_lea.vmem %s1001_s4, %s807_s19 }
  0x38   : > { %v543_v17 = vld.sshfl [vmem:[#allocation1 + $0x8] sm:$0xff pattern:$0x75316420]  ;;  %v542_v18 = vld.sshfl [vmem:[#allocation1] sm:$0xff pattern:$0x75316420] }
  0x39   : > { %547 = vrot.lane.b32.xlu1 %v543_v17, %s892_s26  ;;  %545 = vrot.lane.b32.xlu0 %v542_v18, %s892_s26 }
  0x3a   : > { %549 = vrot.lane.b32.xlu2 %v544_v16, %s892_s26 }
  0x7c   : > { %v410_v20 = vpop.permute.xlu2 %409 }
  0x84   : > { %v408_v22 = vpop.permute.xlu2 %407 }
  0x85   : > { %v413_v25 = vsel %vm411_vm2, %v408_v22, %v410_v20 }
  0x8b   : > { %v286_v21 = vpop.permute.xlu0 %285 }
  0x8c   : > { %v290_v23 = vpop.permute.xlu1 %289  ;;  %v480_v32 = vpop.permute.xlu2 %479 }
  0x93   : > { %v288_v24 = vpop.permute.xlu0 %287 }
  0x94   : > { %v292_v27 = vsel %vm291_vm3, %v286_v21, %v288_v24  ;;  %v293_v28 = vsel %vm291_vm3, %v288_v24, %v290_v23  ;;  %v550_v38 = vpop.permute.xlu2 %549 }
  0x95   : > { %810 = vmatpush.msk.msra.mxu0 %vm298_vm0, %v292_v27  ;;  %812 = vmatpush.msk.msra.mxu1 %vm298_vm0, %v293_v28 }
  0x96   : > { %811 = vmatmul.msk.f32.vlgmr.msra.gmra.mxu0 %vm294_vm1, %v809_v26  ;;  %813 = vmatmul.msk.f32.vlgmr.msra.gmra.mxu1 %vm294_vm1, %v809_v26 }
  0x97   : > { %821 = vmatpush.msk.msrb.mxu1 %vm298_vm0, %v413_v25 }
  0x9b   : > { %v406_v29 = vpop.permute.xlu1 %405 }
  0x9c   : > { %v412_v31 = vsel %vm411_vm2, %v406_v29, %v408_v22 }
  0x9d   : > { %819 = vmatpush.msk.msrb.mxu0 %vm298_vm0, %v412_v31 }
  0x9e   : > { %820 = vmatmul.msk.f32.vlgmr.msrb.gmra.mxu0 %vm294_vm1, %v818_v30  ;;  %822 = vmatmul.msk.f32.vlgmr.msrb.gmra.mxu1 %vm294_vm1, %v818_v30 }
  0xa3   : > { %v478_v33 = vpop.permute.xlu1 %477  ;;  %v476_v34 = vpop.permute.xlu0 %475 }
  0xa4   : > { %v482_v36 = vsel %vm481_vm4, %v476_v34, %v478_v33  ;;  %v483_v37 = vsel %vm481_vm4, %v478_v33, %v480_v32 }
  0xa5   : > { %824 = vmatpush.msk.msrb.mxu2 %vm298_vm0, %v482_v36  ;;  %826 = vmatpush.msk.msrb.mxu3 %vm298_vm0, %v483_v37 }
  0xa6   : > { %825 = vmatmul.msk.f32.vlgmr.msrb.gmra.mxu2 %vm294_vm1, %v823_v35  ;;  %827 = vmatmul.msk.f32.vlgmr.msrb.gmra.mxu3 %vm294_vm1, %v823_v35  ;;  %v370_v46 = vpop.f32.mrf.mxu2  ;;  %v390_v47 = vpop.f32.mrf.mxu3 }
  0xab   : > { %v548_v39 = vpop.permute.xlu1 %547  ;;  %v546_v40 = vpop.permute.xlu0 %545 }
  0xac   : > { %v553_v42 = vsel %vm551_vm5, %v548_v39, %v550_v38  ;;  %v552_v43 = vsel %vm551_vm5, %v546_v40, %v548_v39 }
  0xad   : > { %829 = vmatpush.msk.msra.mxu0 %vm298_vm0, %v552_v43  ;;  %831 = vmatpush.msk.msra.mxu1 %vm298_vm0, %v553_v42 }
  0xae   : > { %830 = vmatmul.msk.f32.vlgmr.msra.gmra.mxu0 %vm294_vm1, %v828_v41  ;;  %832 = vmatmul.msk.f32.vlgmr.msra.gmra.mxu1 %vm294_vm1, %v828_v41 }
 0x113   : > { %v320_v44 = vpop.f32.mrf.mxu0  ;;  %v340_v45 = vpop.f32.mrf.mxu1 }
 0x114   : > { %v371_v50 = vadd.f32 %v370_v46, %v320_v44  ;;  %v391_v51 = vadd.f32 %v390_v47, %v340_v45 }
 0x11b   : > { %v438_v48 = vpop.f32.mrf.mxu0  ;;  %v458_v49 = vpop.f32.mrf.mxu1 }
 0x11c   : > { %v461_v52 = vadd.f32 %v438_v48, %v371_v50  ;;  %v462_v53 = vadd.f32 %v458_v49, %v391_v51 }
 0x129   : > { %v508_v54 = vpop.f32.mrf.mxu2  ;;  %v528_v55 = vpop.f32.mrf.mxu3 }
 0x12a   : > { %v531_v56 = vadd.f32 %v508_v54, %v461_v52  ;;  %v532_v57 = vadd.f32 %v528_v55, %v462_v53 }
 0x12b   : > { %v578_v58 = vpop.f32.mrf.mxu0  ;;  %v598_v59 = vpop.f32.mrf.mxu1 }
 0x12c   : > { %v601_v60 = vadd.f32 %v578_v58, %v531_v56  ;;  %v602_v61 = vadd.f32 %v598_v59, %v532_v57 }
 0x12e   : > { %603 = vst [vmem:[%s256_s14] sm:$0xff] %v601_v60  ;;  %v616_v62 = vadd.f32 %v602_v61, %v601_v60  ;;  %v621_v63 = vmul.f32 %v601_v60, %v601_v60  ;;  %v622_v0 = vmul.f32 %v602_v61, %v602_v61 }
 0x12f   : > { %604 = vst [vmem:[%s256_s14 + $0x8] sm:$0xff] %v602_v61 }
 0x130   : > { %617 = vadd.xlane.f32.xlu0 %v616_v62  ;;  %v623_v1 = vadd.f32 %v622_v0, %v621_v63 }
 0x132   : > { %624 = vadd.xlane.f32.xlu1 %v623_v1 }
 0x1a3   : > { %v618_v2 = vpop.xlane.xlu0 %617 }
 0x1a4   : > { %620 = vst.msk [vmem:[%s264_s22] sm:$0xff] %vm619_vm6, %v618_v2 }
 0x1a5   : > { %v625_v3 = vpop.xlane.xlu1 %624 }
 0x1a6   : > { %626 = vst.msk [vmem:[%s271_s25] sm:$0xff] %vm619_vm6, %v625_v3 }
 0x1a7 PF: > { %s15_s17 = sadd.s32 1, %s887_s17   ;;  %s1002_s15 = smov %s883_s16 }
 0x1a8   : > { %p12_p5 = scmp.ge.s32.totalorder %s15_s17, 4   ;;  %s1003_s16 = smov %s1005_s18 }
 0x1aa   :  { %14 = sbr.rel (!%p12_p5) target bundleno = 2 (0x2), region = 90 }

</bundles_post_ra>
